<compile_context>
chip_gen: v5e
topology: v5e:2x2
jax: 0.10.0
libtpu: 0.0.40
codegen_flags: <defaults>
</compile_context>

<pallas_src>
import functools
import math

import jax
import jax.numpy as jnp
from jax.experimental import pallas as pl
from jax.experimental.pallas import tpu as pltpu


def _round_up(a, b):
    return (a + b - 1) // b * b


def _cdiv(a, b):
    return (a + b - 1) // b


# ----------------------------------------------------------------------------
# Per-generation VMEM budget (queried once at import; safe fallback = 48 MiB).
# ----------------------------------------------------------------------------
def _vmem_limit_bytes():
    try:
        cap = int(pltpu.get_tpu_info().vmem_capacity_bytes)
    except Exception:
        cap = 64 * 1024 * 1024  # conservative (v7x-sized) fallback
    # ~75% of physical VMEM, capped: v5e/v6e (128 MiB) -> 96 MiB, v7x (64) -> 48 MiB.
    return int(min(cap * 3 // 4, 100 * 1024 * 1024))


_VMEM_LIMIT = _vmem_limit_bytes()


# ----------------------------------------------------------------------------
# Fused kernel:  y = x;  for each attached adapter:  y = relu(y@W1 + b1)@W2 + b2
# ----------------------------------------------------------------------------
def _make_fused_adapter_kernel(n_adapters):
    def kernel(x_ref, *rest):
        o_ref = rest[-1]
        p_refs = rest[:-1]                      # 4 refs per adapter
        y = x_ref[...].astype(jnp.float32)      # [TM, Dp]
        for a in range(n_adapters):
            w1, b1, w2, b2 = p_refs[4 * a: 4 * a + 4]
            # DEFAULT precision: single-pass bf16 MXU with f32 accumulation
            # (same path the pure-JAX reference takes; keeps v5e mem-bound).
            h = jnp.dot(y, w1[...], preferred_element_type=jnp.float32)
            h = jnp.maximum(h + b1[...], 0.0)   # bias + ReLU on the VPU, f32
            y = jnp.dot(h, w2[...], preferred_element_type=jnp.float32)
            y = y + b2[...]
        o_ref[...] = y.astype(o_ref.dtype)
    return kernel


# ----------------------------------------------------------------------------
# Lane-dense weight packing (done once, at layer construction)
# ----------------------------------------------------------------------------
def _packing_config(input_dim, hidden_dim):
    """pack so pack*D is a multiple of 128; pad hidden so pack*Hp is too."""
    pack = 128 // math.gcd(input_dim, 128)
    # Guard: kron block-diagonalization inflates MXU flops by `pack`; cap it so
    # the kernel stays HBM-bound even on v5e.
    if pack > 8:
        pack = 1
    if pack > 1:
        # pack divides 128, so round_up(pack*H, 128) is divisible by pack.
        hidden_pad = _round_up(pack * hidden_dim, 128) // pack
    else:
        hidden_pad = hidden_dim
    return pack, hidden_pad


def _pack_one_adapter(p, pack, hidden_pad):
    """p = (w1[D,H], b1[1,H], w2[H,D], b2[1,D]) -> block-diagonal packed tensors."""
    w1, b1, w2, b2 = p
    H = w1.shape[1]
    if hidden_pad != H:
        # Zero padding keeps results exact: padded b1 cols are 0 -> ReLU gives 0,
        # and padded w2 rows are 0 -> contribute nothing.
        w1 = jnp.pad(w1, ((0, 0), (0, hidden_pad - H)))
        b1 = jnp.pad(b1, ((0, 0), (0, hidden_pad - H)))
        w2 = jnp.pad(w2, ((0, hidden_pad - H), (0, 0)))
    if pack > 1:
        eye = jnp.eye(pack, dtype=w1.dtype)
        w1 = jnp.kron(eye, w1)              # [pack*D, pack*Hp] block-diagonal
        w2 = jnp.kron(eye, w2)              # [pack*Hp, pack*D] block-diagonal
        b1 = jnp.tile(b1, (1, pack))        # [1, pack*Hp]
        b2 = jnp.tile(b2, (1, pack))        # [1, pack*D]
    return (w1, b1, w2, b2)


# ----------------------------------------------------------------------------
# Row-tile selection from the VMEM budget
# ----------------------------------------------------------------------------
def _choose_tm(rows, Dp, Hp_pack, n_adapters):
    # Resident weights (pipeline double-buffers them even though their block
    # index never changes).
    weight_bytes = 2 * 4 * n_adapters * (2 * Dp * Hp_pack + Hp_pack + Dp)
    # Per packed row: double-buffered in + out tiles, plus f32 working copies
    # of y and h inside the kernel body.
    per_row_bytes = 4 * (2 * Dp + 2 * Dp + Dp + Hp_pack)
    avail = _VMEM_LIMIT - weight_bytes - (6 << 20)   # headroom for compiler scratch
    tm_budget = min(4096, max(8, avail // per_row_bytes))

    # Keep >=2 (>=4 for big inputs) grid steps so the "parallel" axis can shard
    # across both TensorCores on v7x; tiny inputs stay a single step.
    if rows >= 4096:
        min_steps = 4
    elif rows >= 512:
        min_steps = 2
    else:
        min_steps = 1
    steps = max(_cdiv(rows, tm_budget), min_steps)
    tm = _round_up(max(_cdiv(rows, steps), 8), 8)    # f32 sublane multiple
    return tm


# ----------------------------------------------------------------------------
# Fused forward over a [M, D] activation slab
# ----------------------------------------------------------------------------
@functools.partial(jax.jit, static_argnums=(2,))
def _fused_adapters_2d(x2d, packed_params, pack):
    M, D = x2d.shape
    n_adapters = len(packed_params)
    Dp = pack * D
    Hp_pack = packed_params[0][1].shape[-1]          # pack * hidden_pad

    rows = _cdiv(M, pack)
    tm = _choose_tm(rows, Dp, Hp_pack, n_adapters)
    rows_pad = _round_up(rows, tm)
    m_pad = rows_pad * pack

    x_p = x2d if m_pad == M else jnp.pad(x2d, ((0, m_pad - M), (0, 0)))
    x_p = x_p.reshape(rows_pad, Dp)                  # lane-dense activation slab

    in_specs = [pl.BlockSpec((tm, Dp), lambda i: (i, 0))]
    flat_params = []
    for (w1, b1, w2, b2) in packed_params:
        for arr in (w1, b1, w2, b2):
            # full-array block, same block every step -> weights stay resident
            in_specs.append(pl.BlockSpec(arr.shape, lambda i: (0, 0)))
            flat_params.append(arr)

    weight_bytes = sum(a.size * a.dtype.itemsize for a in flat_params)
    cost = pl.CostEstimate(
        flops=int(4 * rows_pad * n_adapters * Dp * Hp_pack),
        transcendentals=0,
        bytes_accessed=int(2 * rows_pad * Dp * 4 + weight_bytes),
    )

    out = pl.pallas_call(
        _make_fused_adapter_kernel(n_adapters),
        out_shape=jax.ShapeDtypeStruct((rows_pad, Dp), x2d.dtype),
        grid=(rows_pad // tm,),
        in_specs=in_specs,
        out_specs=pl.BlockSpec((tm, Dp), lambda i: (i, 0)),
        compiler_params=pltpu.CompilerParams(
            dimension_semantics=("parallel",),       # shards rows across 2 TCs on v7x
            vmem_limit_bytes=_VMEM_LIMIT,
        ),
        cost_estimate=cost,
    )(x_p, *flat_params)

    out = out.reshape(m_pad, D)
    if m_pad != M:
        out = out[:M]
    return out


# ----------------------------------------------------------------------------
# AdapterLayer equivalent
# ----------------------------------------------------------------------------
def init_adapter_params(key, input_dim, hidden_dim=24, seg_num=2):
    """nn.Linear-style init (uniform +-1/sqrt(fan_in)); weights stored [in, out]."""
    params = []
    for s in range(seg_num):
        k = jax.random.fold_in(key, s)
        k1, k2, k3, k4 = jax.random.split(k, 4)
        bound1 = 1.0 / (input_dim ** 0.5)
        bound2 = 1.0 / (hidden_dim ** 0.5)
        w1 = jax.random.uniform(k1, (input_dim, hidden_dim), jnp.float32, -bound1, bound1)
        b1 = jax.random.uniform(k2, (1, hidden_dim), jnp.float32, -bound1, bound1)
        w2 = jax.random.uniform(k3, (hidden_dim, input_dim), jnp.float32, -bound2, bound2)
        b2 = jax.random.uniform(k4, (1, input_dim), jnp.float32, -bound2, bound2)
        params.append((w1, b1, w2, b2))
    return params


class AdapterLayer:
    """JAX/Pallas port of the PyTorch AdapterLayer."""

    def __init__(self, key, input_dim, hidden_dim=24, seg_num=2):
        self.input_dim = input_dim
        self.hidden_dim = hidden_dim
        self.seg_num = seg_num
        self.params = init_adapter_params(key, input_dim, hidden_dim, seg_num)
        # Precompute lane-dense packed weights ONCE (pad hidden, kron, tile).
        self.pack, self.hidden_pad = _packing_config(input_dim, hidden_dim)
        self.packed_params = tuple(
            _pack_one_adapter(p, self.pack, self.hidden_pad) for p in self.params
        )

    def forward(self, output, attach=None):
        if not isinstance(output, jax.Array):
            raise TypeError
        if attach is None or not functools.reduce(lambda a, b: a or b, attach[: self.seg_num]):
            return None
        selected = tuple(
            self.packed_params[ida] for ida, a in enumerate(attach[: self.seg_num]) if a
        )
        orig_shape = output.shape
        x2d = output.reshape(-1, orig_shape[-1])
        out2d = _fused_adapters_2d(x2d, selected, self.pack)  # one fused pallas_call
        return out2d.reshape(orig_shape)

    __call__ = forward


# ----------------------------------------------------------------------------
# Pure-JAX reference for verification
# ----------------------------------------------------------------------------
def _ref_forward(output, params, attach, seg_num=2):
    if attach is None or not functools.reduce(lambda a, b: a or b, attach[0:seg_num]):
        return None
    ret = None
    for ida, a in enumerate(attach[0:seg_num]):
        if a:
            w1, b1, w2, b2 = params[ida]
            src = output if ret is None else ret
            h = jnp.maximum(src @ w1 + b1[0], 0.0)
            ret = h @ w2 + b2[0]
    return ret


if __name__ == "__main__":
    input_dim, hidden_dim, seg_num = 32, 24, 2
    batch, seq = 2, 8

    key = jax.random.PRNGKey(0)
    kx, kp = jax.random.split(key)

    x = jax.random.normal(kx, (batch, seq, input_dim), jnp.float32)
    layer = AdapterLayer(kp, input_dim, hidden_dim, seg_num)      # pack=4, Hp=32

    # both adapters attached -> chained application, fused into one pallas_call
    attach = [True, True]
    out = jax.block_until_ready(layer.forward(x, attach))
    ref = _ref_forward(x, layer.params, attach, seg_num)
    assert out.shape == x.shape
    assert jnp.allclose(out, ref, atol=1e-5, rtol=1e-5), "mismatch (both adapters)"

    # single adapter
    attach1 = [False, True]
    out1 = jax.block_until_ready(layer.forward(x, attach1))
    ref1 = _ref_forward(x, layer.params, attach1, seg_num)
    assert jnp.allclose(out1, ref1, atol=1e-5, rtol=1e-5), "mismatch (single adapter)"

    # padding path: token count not a multiple of pack / tile
    x_odd = jax.random.normal(jax.random.fold_in(kx, 1), (3, 5, input_dim), jnp.float32)
    out_odd = jax.block_until_ready(layer.forward(x_odd, attach))
    ref_odd = _ref_forward(x_odd, layer.params, attach, seg_num)
    assert jnp.allclose(out_odd, ref_odd, atol=1e-5, rtol=1e-5), "mismatch (padded M)"

    # D=48 now takes the generalized lane-dense path (pack=8, Dp=384)
    layer48 = AdapterLayer(kp, 48, hidden_dim, seg_num)
    x48 = jax.random.normal(jax.random.fold_in(kx, 2), (2, 8, 48), jnp.float32)
    out48 = jax.block_until_ready(layer48.forward(x48, attach))
    ref48 = _ref_forward(x48, layer48.params, attach, seg_num)
    assert jnp.allclose(out48, ref48, atol=1e-5, rtol=1e-5), "mismatch (D=48 packed)"

    # D=128: natural lane-dense layout, pack=1 branch
    layer128 = AdapterLayer(kp, 128, hidden_dim, seg_num)
    x128 = jax.random.normal(jax.random.fold_in(kx, 3), (2, 8, 128), jnp.float32)
    out128 = jax.block_until_ready(layer128.forward(x128, attach))
    ref128 = _ref_forward(x128, layer128.params, attach, seg_num)
    assert jnp.allclose(out128, ref128, atol=1e-5, rtol=1e-5), "mismatch (D=128 pack=1)"

    # "no attach" paths return None, like the PyTorch module
    assert layer.forward(x, None) is None
    assert layer.forward(x, [False, False]) is None

    print("KERNEL_OK")
</pallas_src>

<mosaic_0001>
module attributes {stable_mosaic.version = 11 : i64} {
  func.func @kernel(%arg0: i32, %arg1: memref<8x128xf32, #tpu.memory_space<vmem>>, %arg2: memref<128x128xf32, #tpu.memory_space<vmem>>, %arg3: memref<1x128xf32, #tpu.memory_space<vmem>>, %arg4: memref<128x128xf32, #tpu.memory_space<vmem>>, %arg5: memref<1x128xf32, #tpu.memory_space<vmem>>, %arg6: memref<128x128xf32, #tpu.memory_space<vmem>>, %arg7: memref<1x128xf32, #tpu.memory_space<vmem>>, %arg8: memref<128x128xf32, #tpu.memory_space<vmem>>, %arg9: memref<1x128xf32, #tpu.memory_space<vmem>>, %arg10: memref<8x128xf32, #tpu.memory_space<vmem>>) attributes {dimension_semantics = [#tpu.dimension_semantics<parallel>], iteration_bounds = array<i64: 1>, scalar_prefetch = 0 : i64, scratch_operands = 0 : i64, tpu.core_type = #tpu.core_type<tc>, window_params = [{transform_indices = @transform_0, window_bounds = array<i64: 8, 128>}, {pipeline_mode = #tpu.pipeline_mode<synchronous>, transform_indices = @transform_1, window_bounds = array<i64: 128, 128>}, {pipeline_mode = #tpu.pipeline_mode<synchronous>, transform_indices = @transform_2, window_bounds = array<i64: 1, 128>}, {pipeline_mode = #tpu.pipeline_mode<synchronous>, transform_indices = @transform_3, window_bounds = array<i64: 128, 128>}, {pipeline_mode = #tpu.pipeline_mode<synchronous>, transform_indices = @transform_4, window_bounds = array<i64: 1, 128>}, {pipeline_mode = #tpu.pipeline_mode<synchronous>, transform_indices = @transform_5, window_bounds = array<i64: 128, 128>}, {pipeline_mode = #tpu.pipeline_mode<synchronous>, transform_indices = @transform_6, window_bounds = array<i64: 1, 128>}, {pipeline_mode = #tpu.pipeline_mode<synchronous>, transform_indices = @transform_7, window_bounds = array<i64: 128, 128>}, {pipeline_mode = #tpu.pipeline_mode<synchronous>, transform_indices = @transform_8, window_bounds = array<i64: 1, 128>}, {transform_indices = @transform_9, window_bounds = array<i64: 8, 128>}]} {
    %c0 = arith.constant 0 : index
    %c0_0 = arith.constant 0 : index
    %0 = vector.load %arg1[%c0, %c0_0] : memref<8x128xf32, #tpu.memory_space<vmem>>, vector<8x128xf32>
    %c0_1 = arith.constant 0 : index
    %c0_2 = arith.constant 0 : index
    %1 = vector.load %arg2[%c0_1, %c0_2] : memref<128x128xf32, #tpu.memory_space<vmem>>, vector<128x128xf32>
    %cst = arith.constant dense<0.000000e+00> : vector<8x128xf32>
    %2 = tpu.matmul %0, %1, %cst {dimension_numbers = #tpu.dot_dimension_numbers<[1], [0], [0], [1], [0, 0, 1, 1], [], []>} : vector<8x128xf32>, vector<128x128xf32>, vector<8x128xf32> -> vector<8x128xf32>
    %c0_3 = arith.constant 0 : index
    %c0_4 = arith.constant 0 : index
    %3 = vector.load %arg3[%c0_3, %c0_4] : memref<1x128xf32, #tpu.memory_space<vmem>>, vector<1x128xf32>
    %4 = vector.broadcast %3 : vector<1x128xf32> to vector<8x128xf32>
    %5 = arith.addf %2, %4 : vector<8x128xf32>
    %cst_5 = arith.constant 0.000000e+00 : f32
    %6 = vector.broadcast %cst_5 : f32 to vector<8x128xf32>
    %7 = arith.maximumf %5, %6 : vector<8x128xf32>
    %c0_6 = arith.constant 0 : index
    %c0_7 = arith.constant 0 : index
    %8 = vector.load %arg4[%c0_6, %c0_7] : memref<128x128xf32, #tpu.memory_space<vmem>>, vector<128x128xf32>
    %cst_8 = arith.constant dense<0.000000e+00> : vector<8x128xf32>
    %9 = tpu.matmul %7, %8, %cst_8 {dimension_numbers = #tpu.dot_dimension_numbers<[1], [0], [0], [1], [0, 0, 1, 1], [], []>} : vector<8x128xf32>, vector<128x128xf32>, vector<8x128xf32> -> vector<8x128xf32>
    %c0_9 = arith.constant 0 : index
    %c0_10 = arith.constant 0 : index
    %10 = vector.load %arg5[%c0_9, %c0_10] : memref<1x128xf32, #tpu.memory_space<vmem>>, vector<1x128xf32>
    %11 = vector.broadcast %10 : vector<1x128xf32> to vector<8x128xf32>
    %12 = arith.addf %9, %11 : vector<8x128xf32>
    %c0_11 = arith.constant 0 : index
    %c0_12 = arith.constant 0 : index
    %13 = vector.load %arg6[%c0_11, %c0_12] : memref<128x128xf32, #tpu.memory_space<vmem>>, vector<128x128xf32>
    %cst_13 = arith.constant dense<0.000000e+00> : vector<8x128xf32>
    %14 = tpu.matmul %12, %13, %cst_13 {dimension_numbers = #tpu.dot_dimension_numbers<[1], [0], [0], [1], [0, 0, 1, 1], [], []>} : vector<8x128xf32>, vector<128x128xf32>, vector<8x128xf32> -> vector<8x128xf32>
    %c0_14 = arith.constant 0 : index
    %c0_15 = arith.constant 0 : index
    %15 = vector.load %arg7[%c0_14, %c0_15] : memref<1x128xf32, #tpu.memory_space<vmem>>, vector<1x128xf32>
    %16 = vector.broadcast %15 : vector<1x128xf32> to vector<8x128xf32>
    %17 = arith.addf %14, %16 : vector<8x128xf32>
    %cst_16 = arith.constant 0.000000e+00 : f32
    %18 = vector.broadcast %cst_16 : f32 to vector<8x128xf32>
    %19 = arith.maximumf %17, %18 : vector<8x128xf32>
    %c0_17 = arith.constant 0 : index
    %c0_18 = arith.constant 0 : index
    %20 = vector.load %arg8[%c0_17, %c0_18] : memref<128x128xf32, #tpu.memory_space<vmem>>, vector<128x128xf32>
    %cst_19 = arith.constant dense<0.000000e+00> : vector<8x128xf32>
    %21 = tpu.matmul %19, %20, %cst_19 {dimension_numbers = #tpu.dot_dimension_numbers<[1], [0], [0], [1], [0, 0, 1, 1], [], []>} : vector<8x128xf32>, vector<128x128xf32>, vector<8x128xf32> -> vector<8x128xf32>
    %c0_20 = arith.constant 0 : index
    %c0_21 = arith.constant 0 : index
    %22 = vector.load %arg9[%c0_20, %c0_21] : memref<1x128xf32, #tpu.memory_space<vmem>>, vector<1x128xf32>
    %23 = vector.broadcast %22 : vector<1x128xf32> to vector<8x128xf32>
    %24 = arith.addf %21, %23 : vector<8x128xf32>
    %c0_22 = arith.constant 0 : index
    %c0_23 = arith.constant 0 : index
    %25 = vector.load %arg10[%c0_22, %c0_23] : memref<8x128xf32, #tpu.memory_space<vmem>>, vector<8x128xf32>
    tpu.vector_store %arg10[%c0_22, %c0_23], %24 {strides = array<i32>} : memref<8x128xf32, #tpu.memory_space<vmem>>, vector<8x128xf32>,
    return
  }
  func.func @transform_0(%arg0: i32) -> (i32, i32) {
    %c0_i32 = arith.constant 0 : i32
    %c0_i32_0 = arith.constant 0 : i32
    return %arg0, %c0_i32 : i32, i32
  }
  func.func @transform_1(%arg0: i32) -> (i32, i32) {
    %c0_i32 = arith.constant 0 : i32
    %c0_i32_0 = arith.constant 0 : i32
    %c0_i32_1 = arith.constant 0 : i32
    return %c0_i32, %c0_i32_0 : i32, i32
  }
  func.func @transform_2(%arg0: i32) -> (i32, i32) {
    %c0_i32 = arith.constant 0 : i32
    %c0_i32_0 = arith.constant 0 : i32
    %c0_i32_1 = arith.constant 0 : i32
    return %c0_i32, %c0_i32_0 : i32, i32
  }
  func.func @transform_3(%arg0: i32) -> (i32, i32) {
    %c0_i32 = arith.constant 0 : i32
    %c0_i32_0 = arith.constant 0 : i32
    %c0_i32_1 = arith.constant 0 : i32
    return %c0_i32, %c0_i32_0 : i32, i32
  }
  func.func @transform_4(%arg0: i32) -> (i32, i32) {
    %c0_i32 = arith.constant 0 : i32
    %c0_i32_0 = arith.constant 0 : i32
    %c0_i32_1 = arith.constant 0 : i32
    return %c0_i32, %c0_i32_0 : i32, i32
  }
  func.func @transform_5(%arg0: i32) -> (i32, i32) {
    %c0_i32 = arith.constant 0 : i32
    %c0_i32_0 = arith.constant 0 : i32
    %c0_i32_1 = arith.constant 0 : i32
    return %c0_i32, %c0_i32_0 : i32, i32
  }
  func.func @transform_6(%arg0: i32) -> (i32, i32) {
    %c0_i32 = arith.constant 0 : i32
    %c0_i32_0 = arith.constant 0 : i32
    %c0_i32_1 = arith.constant 0 : i32
    return %c0_i32, %c0_i32_0 : i32, i32
  }
  func.func @transform_7(%arg0: i32) -> (i32, i32) {
    %c0_i32 = arith.constant 0 : i32
    %c0_i32_0 = arith.constant 0 : i32
    %c0_i32_1 = arith.constant 0 : i32
    return %c0_i32, %c0_i32_0 : i32, i32
  }
  func.func @transform_8(%arg0: i32) -> (i32, i32) {
    %c0_i32 = arith.constant 0 : i32
    %c0_i32_0 = arith.constant 0 : i32
    %c0_i32_1 = arith.constant 0 : i32
    return %c0_i32, %c0_i32_0 : i32, i32
  }
  func.func @transform_9(%arg0: i32) -> (i32, i32) {
    %c0_i32 = arith.constant 0 : i32
    %c0_i32_0 = arith.constant 0 : i32
    return %arg0, %c0_i32 : i32, i32
  }
}

</mosaic_0001>

<bundles_post_ra>
// kernel: _fused_adapters_2d.1
= control target key start
LH: loop header
LB: loop body
LE: loop exit
PB: predicated region body
PF: predicated region fallthrough
CT: control target
= control target key end

     0   :  { %14 = vsyncpa [#allocation3], 0  ;;  %s464_s0 = inlined_call_operand.vmem [shape: f32[8,128], index: 0, kind: input, shape index: {}]   ;;  %s465_s1 = inlined_call_operand.hbm [shape: f32[128,128], index: 1, kind: input, shape index: {}]   ;;  %s466_s2 = inlined_call_operand.vmem [shape: f32[1,128], index: 2, kind: input, shape index: {}]   ;;  %s467_s3 = inlined_call_operand.hbm [shape: f32[128,128], index: 3, kind: input, shape index: {}]   ;;  %s468_s4 = inlined_call_operand.vmem [shape: f32[1,128], index: 4, kind: input, shape index: {}]   ;;  %s469_s5 = inlined_call_operand.hbm [shape: f32[128,128], index: 5, kind: input, shape index: {}]   ;;  %s470_s6 = inlined_call_operand.vmem [shape: f32[1,128], index: 6, kind: input, shape index: {}]   ;;  %s471_s7 = inlined_call_operand.hbm [shape: f32[128,128], index: 7, kind: input, shape index: {}]   ;;  %s472_s8 = inlined_call_operand.vmem [shape: f32[1,128], index: 8, kind: input, shape index: {}]   ;;  %s473_s9 = inlined_call_operand.vmem [shape: f32[8,128], index: 9, kind: output, shape index: {}]  }
   0x1   :  { %15 = vsyncpa [#allocation5], 0 }
   0x2   :  { %16 = vsyncpa [#allocation8], 0  ;;  %s38_s11 = sshll.u32 %s467_s3, 4  ;;  %s378_s12 = smov [#allocation4]   ;;  %s39_s11 = int_to_ptr.hbm [resolvable:$true] %s38_s11 }
   0x3   :  { %s40_s13 = sshll.u32 %s378_s12, 4  ;;  %s23_s16 = sshll.u32 %s465_s1, 4  ;;  %s41_s13 = int_to_ptr.vmem [resolvable:$true] %s40_s13  ;;  %s24_s16 = int_to_ptr.hbm [resolvable:$true] %s23_s16 }
   0x4   :  { %s379_s17 = smov 128   ;;  %s380_s18 = smov 8  }
   0x5   :  { %46 = dma.hbm_to_vmem [thread:$0]  %s39_s11, 2048, %s41_s13, [#allocation5], %s379_s17, %s379_s17, %s380_s18  }
   0x6   :  { %s381_s19 = smov [#allocation2]   ;;  %s53_s23 = sshll.u32 %s469_s5, 4  ;;  %s54_s23 = int_to_ptr.hbm [resolvable:$true] %s53_s23 }
   0x7   :  { %s25_s20 = sshll.u32 %s381_s19, 4  ;;  %s68_s25 = sshll.u32 %s471_s7, 4  ;;  %s26_s20 = int_to_ptr.vmem [resolvable:$true] %s25_s20  ;;  %s69_s25 = int_to_ptr.hbm [resolvable:$true] %s68_s25 }
   0x8   :  { %31 = dma.hbm_to_vmem [thread:$0]  %s24_s16, 2048, %s26_s20, [#allocation3], %s379_s17, %s379_s17, %s380_s18  }
   0x9   :  { %s382_s26 = smov [#allocation6]   ;;  %s383_s1 = smov [#allocation7]  }
   0xa   :  { %s55_s27 = sshll.u32 %s382_s26, 4  ;;  %s70_s28 = sshll.u32 %s383_s1, 4  ;;  %s56_s27 = int_to_ptr.vmem [resolvable:$true] %s55_s27  ;;  %s71_s28 = int_to_ptr.vmem [resolvable:$true] %s70_s28 }
   0xb   :  { %61 = dma.hbm_to_vmem [thread:$0]  %s54_s23, 2048, %s56_s27, [#allocation5], %s379_s17, %s379_s17, %s380_s18  }
   0xc   :  { %76 = dma.hbm_to_vmem [thread:$0]  %s69_s25, 2048, %s71_s28, [#allocation8], %s379_s17, %s379_s17, %s380_s18  }
   0xd   :  { %372 = dma.done.wait [#allocation3], 2048  }
   0xe   :  { %373 = vsyncadd [#allocation3], 4294965248 }
   0xf   :  { %374 = dma.done.wait [#allocation5], 4096  }
  0x10   :  { %375 = vsyncadd [#allocation5], 4294963200 }
  0x11   :  { %376 = dma.done.wait [#allocation8], 2048  }
  0x12   :  { %377 = vsyncadd [#allocation8], 4294965248  ;;  %v111_v0 = vld [vmem:[#allocation2 + $0x78] sm:$0xff]  ;;  %v110_v1 = vld [vmem:[#allocation2 + $0x70] sm:$0xff] }
  0x13   :  { %116 = vmatpush.msra.mxu0 %v111_v0  ;;  %v109_v2 = vld [vmem:[#allocation2 + $0x68] sm:$0xff]  ;;  %v108_v3 = vld [vmem:[#allocation2 + $0x60] sm:$0xff]  ;;  %v152_v4 = vld [vmem:[#allocation4 + $0x78] sm:$0xff] }
  0x14   :  { %v107_v5 = vld [vmem:[#allocation2 + $0x58] sm:$0xff]  ;;  %157 = vmatpush.msra.mxu1 %v152_v4  ;;  %v151_v6 = vld [vmem:[#allocation4 + $0x70] sm:$0xff]  ;;  %v150_v7 = vld [vmem:[#allocation4 + $0x68] sm:$0xff] }
  0x15   :  { %117 = vmatpush.msra.mxu0 %v110_v1  ;;  %v106_v8 = vld [vmem:[#allocation2 + $0x50] sm:$0xff]  ;;  %v149_v9 = vld [vmem:[#allocation4 + $0x60] sm:$0xff]  ;;  %v105_v10 = vld [vmem:[#allocation2 + $0x48] sm:$0xff] }
  0x16   :  { %158 = vmatpush.msra.mxu1 %v151_v6  ;;  %v148_v11 = vld [vmem:[#allocation4 + $0x58] sm:$0xff]  ;;  %v104_v12 = vld [vmem:[#allocation2 + $0x40] sm:$0xff]  ;;  %v147_v13 = vld [vmem:[#allocation4 + $0x50] sm:$0xff] }
  0x17   :  { %118 = vmatpush.msra.mxu0 %v109_v2  ;;  %v103_v14 = vld [vmem:[#allocation2 + $0x38] sm:$0xff]  ;;  %v146_v15 = vld [vmem:[#allocation4 + $0x48] sm:$0xff]  ;;  %v102_v16 = vld [vmem:[#allocation2 + $0x30] sm:$0xff] }
  0x18   :  { %159 = vmatpush.msra.mxu1 %v150_v7  ;;  %v145_v17 = vld [vmem:[#allocation4 + $0x40] sm:$0xff]  ;;  %v101_v18 = vld [vmem:[#allocation2 + $0x28] sm:$0xff]  ;;  %v144_v19 = vld [vmem:[#allocation4 + $0x38] sm:$0xff] }
  0x19   :  { %119 = vmatpush.msra.mxu0 %v108_v3  ;;  %v100_v20 = vld [vmem:[#allocation2 + $0x20] sm:$0xff]  ;;  %v143_v21 = vld [vmem:[#allocation4 + $0x30] sm:$0xff]  ;;  %v99_v22 = vld [vmem:[#allocation2 + $0x18] sm:$0xff] }
  0x1a   :  { %160 = vmatpush.msra.mxu1 %v149_v9  ;;  %v142_v23 = vld [vmem:[#allocation4 + $0x28] sm:$0xff]  ;;  %v98_v24 = vld [vmem:[#allocation2 + $0x10] sm:$0xff]  ;;  %v141_v25 = vld [vmem:[#allocation4 + $0x20] sm:$0xff] }
  0x1b   :  { %120 = vmatpush.msra.mxu0 %v107_v5  ;;  %v97_v26 = vld [vmem:[#allocation2 + $0x8] sm:$0xff]  ;;  %v140_v27 = vld [vmem:[#allocation4 + $0x18] sm:$0xff]  ;;  %v96_v28 = vld [vmem:[#allocation2] sm:$0xff] }
  0x1c   :  { %161 = vmatpush.msra.mxu1 %v148_v11  ;;  %v95_v29 = vld [vmem:[%s464_s0] sm:$0xff]  ;;  %v139_v30 = vld [vmem:[#allocation4 + $0x10] sm:$0xff]  ;;  %v138_v31 = vld [vmem:[#allocation4 + $0x8] sm:$0xff] }
  0x1d   :  { %121 = vmatpush.msra.mxu0 %v106_v8  ;;  %v137_v32 = vld [vmem:[#allocation4] sm:$0xff]  ;;  %v192_v33 = vld [vmem:[#allocation6 + $0x78] sm:$0xff]  ;;  %v191_v34 = vld [vmem:[#allocation6 + $0x70] sm:$0xff] }
  0x1e   :  { %162 = vmatpush.msra.mxu1 %v147_v13  ;;  %197 = vmatpush.msra.mxu2 %v192_v33  ;;  %v190_v35 = vld [vmem:[#allocation6 + $0x68] sm:$0xff]  ;;  %v189_v36 = vld [vmem:[#allocation6 + $0x60] sm:$0xff]  ;;  %v188_v37 = vld [vmem:[#allocation6 + $0x58] sm:$0xff] }
  0x1f   :  { %122 = vmatpush.msra.mxu0 %v105_v10  ;;  %v187_v38 = vld [vmem:[#allocation6 + $0x50] sm:$0xff]  ;;  %v186_v39 = vld [vmem:[#allocation6 + $0x48] sm:$0xff]  ;;  %v185_v40 = vld [vmem:[#allocation6 + $0x40] sm:$0xff] }
  0x20   :  { %163 = vmatpush.msra.mxu1 %v146_v15  ;;  %198 = vmatpush.msra.mxu2 %v191_v34  ;;  %v184_v41 = vld [vmem:[#allocation6 + $0x38] sm:$0xff]  ;;  %v183_v42 = vld [vmem:[#allocation6 + $0x30] sm:$0xff]  ;;  %v182_v43 = vld [vmem:[#allocation6 + $0x28] sm:$0xff] }
  0x21   :  { %123 = vmatpush.msra.mxu0 %v104_v12  ;;  %v181_v44 = vld [vmem:[#allocation6 + $0x20] sm:$0xff]  ;;  %v180_v45 = vld [vmem:[#allocation6 + $0x18] sm:$0xff]  ;;  %v179_v47 = vld [vmem:[#allocation6 + $0x10] sm:$0xff] }
  0x22   :  { %164 = vmatpush.msra.mxu1 %v145_v17  ;;  %199 = vmatpush.msra.mxu2 %v190_v35  ;;  %v272_v46 = vld [vmem:[%s466_s2] ss:$0 sm:$0xff]  ;;  %v178_v51 = vld [vmem:[#allocation6 + $0x8] sm:$0xff]  ;;  %v233_v53 = vld [vmem:[#allocation7 + $0x78] sm:$0xff] }
  0x23   :  { %124 = vmatpush.msra.mxu0 %v103_v14  ;;  %v177_v52 = vld [vmem:[#allocation6] sm:$0xff]  ;;  %v232_v54 = vld [vmem:[#allocation7 + $0x70] sm:$0xff]  ;;  %238 = vmatpush.msra.mxu3 %v233_v53  ;;  %v231_v55 = vld [vmem:[#allocation7 + $0x68] sm:$0xff] }
  0x24   :  { %165 = vmatpush.msra.mxu1 %v144_v19  ;;  %200 = vmatpush.msra.mxu2 %v189_v36  ;;  %v230_v56 = vld [vmem:[#allocation7 + $0x60] sm:$0xff]  ;;  %v229_v57 = vld [vmem:[#allocation7 + $0x58] sm:$0xff]  ;;  %v228_v58 = vld [vmem:[#allocation7 + $0x50] sm:$0xff] }
  0x25   :  { %125 = vmatpush.msra.mxu0 %v102_v16  ;;  %239 = vmatpush.msra.mxu3 %v232_v54  ;;  %v227_v59 = vld [vmem:[#allocation7 + $0x48] sm:$0xff]  ;;  %v226_v60 = vld [vmem:[#allocation7 + $0x40] sm:$0xff]  ;;  %v225_v61 = vld [vmem:[#allocation7 + $0x38] sm:$0xff] }
  0x26   :  { %166 = vmatpush.msra.mxu1 %v143_v21  ;;  %201 = vmatpush.msra.mxu2 %v188_v37  ;;  %v224_v62 = vld [vmem:[#allocation7 + $0x30] sm:$0xff]  ;;  %v223_v63 = vld [vmem:[#allocation7 + $0x28] sm:$0xff]  ;;  %v222_v0 = vld [vmem:[#allocation7 + $0x20] sm:$0xff] }
  0x27   :  { %126 = vmatpush.msra.mxu0 %v101_v18  ;;  %240 = vmatpush.msra.mxu3 %v231_v55  ;;  %v221_v1 = vld [vmem:[#allocation7 + $0x18] sm:$0xff]  ;;  %v273_v2 = vld [vmem:[%s468_s4] ss:$0 sm:$0xff]  ;;  %v220_v5 = vld [vmem:[#allocation7 + $0x10] sm:$0xff] }
  0x28   :  { %167 = vmatpush.msra.mxu1 %v142_v23  ;;  %202 = vmatpush.msra.mxu2 %v187_v38  ;;  %v219_v6 = vld [vmem:[#allocation7 + $0x8] sm:$0xff]  ;;  %v218_v7 = vld [vmem:[#allocation7] sm:$0xff] }
  0x29   :  { %127 = vmatpush.msra.mxu0 %v100_v20  ;;  %241 = vmatpush.msra.mxu3 %v230_v56  ;;  %v274_v8 = vld [vmem:[%s470_s6] ss:$0 sm:$0xff] }
  0x2a   :  { %168 = vmatpush.msra.mxu1 %v141_v25  ;;  %203 = vmatpush.msra.mxu2 %v186_v39  ;;  %v275_v12 = vld [vmem:[%s472_s8] ss:$0 sm:$0xff] }
  0x2b   :  { %128 = vmatpush.msra.mxu0 %v99_v22  ;;  %242 = vmatpush.msra.mxu3 %v229_v57 }
  0x2c   :  { %169 = vmatpush.msra.mxu1 %v140_v27  ;;  %204 = vmatpush.msra.mxu2 %v185_v40 }
  0x2d   :  { %129 = vmatpush.msra.mxu0 %v98_v24  ;;  %243 = vmatpush.msra.mxu3 %v228_v58 }
  0x2e   :  { %170 = vmatpush.msra.mxu1 %v139_v30  ;;  %205 = vmatpush.msra.mxu2 %v184_v41 }
  0x2f   :  { %130 = vmatpush.msra.mxu0 %v97_v26  ;;  %244 = vmatpush.msra.mxu3 %v227_v59 }
  0x30   :  { %171 = vmatpush.msra.mxu1 %v138_v31  ;;  %206 = vmatpush.msra.mxu2 %v183_v42 }
  0x31   :  { %131 = vmatpush.msra.mxu0 %v96_v28  ;;  %245 = vmatpush.msra.mxu3 %v226_v60 }
  0x32   :  { %132 = vmatmul.f32.vlgmr.msra.gmra.mxu0 %v95_v29  ;;  %172 = vmatpush.msra.mxu1 %v137_v32 }
  0x33   :  { %207 = vmatpush.msra.mxu2 %v182_v43  ;;  %246 = vmatpush.msra.mxu3 %v225_v61 }
  0x35   :  { %208 = vmatpush.msra.mxu2 %v181_v44  ;;  %247 = vmatpush.msra.mxu3 %v224_v62 }
  0x37   :  { %209 = vmatpush.msra.mxu2 %v180_v45  ;;  %248 = vmatpush.msra.mxu3 %v223_v63 }
  0x39   :  { %210 = vmatpush.msra.mxu2 %v179_v47  ;;  %249 = vmatpush.msra.mxu3 %v222_v0 }
  0x3b   :  { %211 = vmatpush.msra.mxu2 %v178_v51  ;;  %250 = vmatpush.msra.mxu3 %v221_v1 }
  0x3d   :  { %212 = vmatpush.msra.mxu2 %v177_v52  ;;  %251 = vmatpush.msra.mxu3 %v220_v5 }
  0x3f   :  { %252 = vmatpush.msra.mxu3 %v219_v6 }
  0x41   :  { %253 = vmatpush.msra.mxu3 %v218_v7 }
  0xaf   :  { %v133_v48 = vpop.f32.mrf.mxu0 }
  0xb0   :  { %v134_v49 = vadd.f32 %v272_v46, %v133_v48 }
  0xb2   :  { %v136_v50 = vmax.f32 %v134_v49, 0.0 }
  0xb4   :  { %173 = vmatmul.f32.vlgmr.msra.gmra.mxu1 %v136_v50 }
 0x131   :  { %v174_v3 = vpop.f32.mrf.mxu1 }
 0x132   :  { %v175_v4 = vadd.f32 %v273_v2, %v174_v3 }
 0x134   :  { %213 = vmatmul.f32.vlgmr.msra.gmra.mxu2 %v175_v4 }
 0x1b7   :  { %v214_v9 = vpop.f32.mrf.mxu2 }
 0x1b8   :  { %v215_v10 = vadd.f32 %v274_v8, %v214_v9 }
 0x1ba   :  { %v217_v11 = vmax.f32 %v215_v10, 0.0 }
 0x1bc   :  { %254 = vmatmul.f32.vlgmr.msra.gmra.mxu3 %v217_v11 }
 0x23f   :  { %v255_v13 = vpop.f32.mrf.mxu3 }
 0x240   :  { %v256_v14 = vadd.f32 %v275_v12, %v255_v13 }
 0x242   :  { %258 = vst [vmem:[%s473_s9] sm:$0xff] %v256_v14 }
 0x243   :  { %263 = vsyncpa [#allocation3], 1 }
 0x244   :  { %264 = vsyncpa [#allocation5], 1 }
 0x245   :  { %265 = vsyncpa [#allocation8], 1 }

</bundles_post_ra>
